<compile_context>
chip_gen: v6e
topology: v6e:2x2x1
jax: 0.10.0
libtpu: 0.0.40
codegen_flags: <defaults>
</compile_context>

<pallas_src>
import functools

import jax
import jax.numpy as jnp
from jax.experimental import pallas as pl
from jax.experimental.pallas import tpu as pltpu

HIDDEN = 128                 # per-head hidden width (fixed by the PyTorch module)
FUSED_HIDDEN = 2 * HIDDEN    # both heads' hidden layers side by side

# Conservative per-pipeline VMEM budget: stays well under the v7x 32 MiB scoped
# default (64 MiB physical); irrelevant headroom on v5e/v6e (128 MiB).
_VMEM_BUDGET_BYTES = 20 * 1024 * 1024


def _round_up(x, m):
    return ((x + m - 1) // m) * m


def _head_kernel(x_ref, w1_ref, b1_ref, w2t_ref, b2t_ref, w2e_ref, b2e_ref,
                 rt_ref, et_ref):
    """One (tm, C) row-tile -> rt (tm, 1) and et (tm, T), all f32.

    x is read as f32 straight from HBM (no wrapper pre-cast); the MXU has large
    slack relative to the DMA, so full-precision dots cost no wall-clock.
    """
    x = x_ref[...]                                                    # (tm, C) f32
    h = jnp.dot(x, w1_ref[...], preferred_element_type=jnp.float32)   # (tm, 256)
    h = jnp.maximum(h + b1_ref[...], 0.0)                             # bias + ReLU (VPU)

    ht = h[:, :HIDDEN]     # return-time hidden (lane-aligned slice)
    he = h[:, HIDDEN:]     # event-type hidden  (lane-aligned slice)

    # Return-time head: single output column -> VPU multiply + XLU lane-reduce
    # (w2t stored pre-transposed as (1, 128)); avoids an N=1 MXU matmul.
    rt = jnp.sum(ht * w2t_ref[...], axis=-1, keepdims=True) + b2t_ref[...]

    # Event-type head: (tm, 128) @ (128, T) on the MXU. Narrow store is masked
    # but negligible vs. not writing a 128-wide padded slab to HBM.
    et = jnp.dot(he, w2e_ref[...], preferred_element_type=jnp.float32) + b2e_ref[...]

    rt_ref[...] = rt.astype(rt_ref.dtype)
    et_ref[...] = et.astype(et_ref.dtype)


def pack_params(params):
    """Fuse / lay out the parameters once (hoisted out of the per-forward jit).

    Returns f32 arrays:
      w1  (C, 256)   fused first layer  [return-time | event-type]
      b1  (1, 256)   fused first bias
      w2t (1, 128)   return-time output row (pre-transposed for lane-reduce)
      b2t (1, 1)
      w2e (128, T)   event-type output weights
      b2e (1, T)
    """
    w1 = jnp.concatenate([params["w1t"], params["w1e"]], axis=1)
    b1 = jnp.concatenate([params["b1t"], params["b1e"]], axis=1)
    return dict(
        w1=w1.astype(jnp.float32),
        b1=b1.astype(jnp.float32),
        w2t=params["w2t"].T.astype(jnp.float32),     # (128,1) -> (1,128)
        b2t=params["b2t"].astype(jnp.float32),       # (1,1)
        w2e=params["w2e"].astype(jnp.float32),       # (128,T)
        b2e=params["b2e"].astype(jnp.float32),       # (1,T)
    )


@functools.partial(jax.jit, static_argnames=("tm",))
def prediction_head_forward(enc_output, packed, *, tm=2048):
    """enc_output: (B, S, C) float32 -> ((B, S, 1), (B, S, num_types))."""
    B, S, C = enc_output.shape
    T = packed["w2e"].shape[1]
    M = B * S

    # --- row tiling --------------------------------------------------------
    # Big tiles amortize the ~0.35 us per-grid-step overhead; cap by a VMEM
    # budget so a large C never blows v7x's smaller scoped-VMEM default.
    #   per-row VMEM ~ 2 x-bufs (8C B) + h/temps (~2 KiB) + 2 out-bufs.
    bytes_per_row = 8 * C + 2 * FUSED_HIDDEN * 4 + 8 * (1 + T) + 64
    tm_cap = max(8, (_VMEM_BUDGET_BYTES // bytes_per_row) // 8 * 8)
    tm_req = max(8, (tm // 8) * 8)
    tm_eff = max(8, min(tm_req, tm_cap, _round_up(M, 8)))
    n_tiles = pl.cdiv(M, tm_eff)
    # v7x has 2 TensorCores sharing the "parallel" grid axis: best-effort even
    # tile count so both cores get equal work (no-op on single-TC v5e/v6e).
    if n_tiles > 1 and n_tiles % 2 == 1:
        tm_eff = max(8, _round_up(pl.cdiv(M, n_tiles + 1), 8))
        n_tiles = pl.cdiv(M, tm_eff)

    # No bf16 pre-cast, no jnp.pad: read f32 directly; Pallas clips the ragged
    # last row-tile (OOB rows compute on stale data, their writes are dropped).
    x2d = enc_output.reshape(M, C)

    full2d = lambda shape: pl.BlockSpec(shape, lambda i: (0, 0))
    # NOTE: weight/bias blocks never change index, so Pallas does not re-DMA
    # them across grid steps; they are tiny (< (C+1)*1 KiB) relative to VMEM.

    rt2d, et2d = pl.pallas_call(
        _head_kernel,
        out_shape=(jax.ShapeDtypeStruct((M, 1), jnp.float32),
                   jax.ShapeDtypeStruct((M, T), jnp.float32)),
        grid_spec=pltpu.PrefetchScalarGridSpec(
            num_scalar_prefetch=0,
            grid=(n_tiles,),
            in_specs=[
                pl.BlockSpec((tm_eff, C), lambda i: (i, 0)),   # x row-tile
                full2d((C, FUSED_HIDDEN)),                     # fused W1
                full2d((1, FUSED_HIDDEN)),                     # fused b1
                full2d((1, HIDDEN)),                           # w2t (row)
                full2d((1, 1)),                                # b2t
                full2d((HIDDEN, T)),                           # w2e
                full2d((1, T)),                                # b2e
            ],
            out_specs=[
                pl.BlockSpec((tm_eff, 1), lambda i: (i, 0)),   # rt (narrow)
                pl.BlockSpec((tm_eff, T), lambda i: (i, 0)),   # et (narrow)
            ],
        ),
        compiler_params=pltpu.CompilerParams(
            dimension_semantics=("parallel",),
        ),
    )(x2d, packed["w1"], packed["b1"], packed["w2t"], packed["b2t"],
      packed["w2e"], packed["b2e"])

    # Contiguous reshapes only -- no strided column slices, no slab re-read.
    return rt2d.reshape(B, S, 1), et2d.reshape(B, S, T)


def init_params(key, in_channels, num_types):
    """Deterministic synthetic init (uniform, PyTorch-Linear-style fan-in bound).

    Weights stored as (in, out) -- transposed relative to torch's (out, in).
    Biases stored as (1, out) so they broadcast over the row-tile in-kernel.
    """
    keys = jax.random.split(key, 8)

    def lin(kw, kb, fan_in, fan_out):
        bound = 1.0 / jnp.sqrt(fan_in)
        w = jax.random.uniform(kw, (fan_in, fan_out), jnp.float32, -bound, bound)
        b = jax.random.uniform(kb, (1, fan_out), jnp.float32, -bound, bound)
        return w, b

    w1t, b1t = lin(keys[0], keys[1], in_channels, HIDDEN)
    w2t, b2t = lin(keys[2], keys[3], HIDDEN, 1)
    w1e, b1e = lin(keys[4], keys[5], in_channels, HIDDEN)
    w2e, b2e = lin(keys[6], keys[7], HIDDEN, num_types)
    return dict(w1t=w1t, b1t=b1t, w2t=w2t, b2t=b2t,
                w1e=w1e, b1e=b1e, w2e=w2e, b2e=b2e)


def _reference(enc_output, params):
    """Pure-JAX f32 reference of the PyTorch forward."""
    hi = jax.lax.Precision.HIGHEST

    def mlp(x, w1, b1, w2, b2):
        h = jnp.maximum(jnp.dot(x, w1, precision=hi) + b1, 0.0)
        return jnp.dot(h, w2, precision=hi) + b2

    rt = mlp(enc_output, params["w1t"], params["b1t"], params["w2t"], params["b2t"])
    et = mlp(enc_output, params["w1e"], params["b1e"], params["w2e"], params["b2e"])
    return rt, et


if __name__ == "__main__":
    B, S, C, T = 2, 8, 32, 4
    key = jax.random.PRNGKey(0)
    k_x, k_p = jax.random.split(key)

    enc_output = jax.random.normal(k_x, (B, S, C), jnp.float32)
    params = init_params(k_p, C, T)
    packed = pack_params(params)          # pack once, reuse across forwards

    rt, et = prediction_head_forward(enc_output, packed)
    jax.block_until_ready((rt, et))

    assert rt.shape == (B, S, 1) and et.shape == (B, S, T)

    # All-f32 kernel; tolerance leaves headroom for the MXU's default f32
    # matmul path (bf16-pass based on some generations).
    rt_f32, et_f32 = _reference(enc_output, params)
    assert jnp.allclose(rt, rt_f32, atol=2e-2, rtol=2e-2)
    assert jnp.allclose(et, et_f32, atol=2e-2, rtol=2e-2)

    print("KERNEL_OK")
</pallas_src>

<mosaic_0001>
module attributes {stable_mosaic.version = 11 : i64} {
  func.func @_head_kernel(%arg0: i32, %arg1: memref<16x32xf32, #tpu.memory_space<vmem>>, %arg2: memref<32x256xf32, #tpu.memory_space<vmem>>, %arg3: memref<1x256xf32, #tpu.memory_space<vmem>>, %arg4: memref<1x128xf32, #tpu.memory_space<vmem>>, %arg5: memref<1x1xf32, #tpu.memory_space<vmem>>, %arg6: memref<128x4xf32, #tpu.memory_space<vmem>>, %arg7: memref<1x4xf32, #tpu.memory_space<vmem>>, %arg8: memref<16x1xf32, #tpu.memory_space<vmem>>, %arg9: memref<16x4xf32, #tpu.memory_space<vmem>>) attributes {dimension_semantics = [#tpu.dimension_semantics<parallel>], iteration_bounds = array<i64: 1>, scalar_prefetch = 0 : i64, scratch_operands = 0 : i64, tpu.core_type = #tpu.core_type<tc>, window_params = [{transform_indices = @transform_0, window_bounds = array<i64: 16, 32>}, {pipeline_mode = #tpu.pipeline_mode<synchronous>, transform_indices = @transform_1, window_bounds = array<i64: 32, 256>}, {pipeline_mode = #tpu.pipeline_mode<synchronous>, transform_indices = @transform_2, window_bounds = array<i64: 1, 256>}, {pipeline_mode = #tpu.pipeline_mode<synchronous>, transform_indices = @transform_3, window_bounds = array<i64: 1, 128>}, {pipeline_mode = #tpu.pipeline_mode<synchronous>, transform_indices = @transform_4, window_bounds = array<i64: 1, 1>}, {pipeline_mode = #tpu.pipeline_mode<synchronous>, transform_indices = @transform_5, window_bounds = array<i64: 128, 4>}, {pipeline_mode = #tpu.pipeline_mode<synchronous>, transform_indices = @transform_6, window_bounds = array<i64: 1, 4>}, {transform_indices = @transform_7, window_bounds = array<i64: 16, 1>}, {transform_indices = @transform_8, window_bounds = array<i64: 16, 4>}]} {
    %c0 = arith.constant 0 : index
    %c0_0 = arith.constant 0 : index
    %0 = vector.load %arg1[%c0, %c0_0] : memref<16x32xf32, #tpu.memory_space<vmem>>, vector<16x32xf32>
    %c0_1 = arith.constant 0 : index
    %c0_2 = arith.constant 0 : index
    %1 = vector.load %arg2[%c0_1, %c0_2] : memref<32x256xf32, #tpu.memory_space<vmem>>, vector<32x256xf32>
    %cst = arith.constant dense<0.000000e+00> : vector<16x256xf32>
    %2 = tpu.matmul %0, %1, %cst {dimension_numbers = #tpu.dot_dimension_numbers<[1], [0], [0], [1], [0, 0, 1, 1], [], []>} : vector<16x32xf32>, vector<32x256xf32>, vector<16x256xf32> -> vector<16x256xf32>
    %c0_3 = arith.constant 0 : index
    %c0_4 = arith.constant 0 : index
    %3 = vector.load %arg3[%c0_3, %c0_4] : memref<1x256xf32, #tpu.memory_space<vmem>>, vector<1x256xf32>
    %4 = vector.broadcast %3 : vector<1x256xf32> to vector<16x256xf32>
    %5 = arith.addf %2, %4 : vector<16x256xf32>
    %cst_5 = arith.constant 0.000000e+00 : f32
    %6 = vector.broadcast %cst_5 : f32 to vector<16x256xf32>
    %7 = arith.maximumf %5, %6 : vector<16x256xf32>
    %8 = vector.extract_strided_slice %7 {offsets = [0, 0], sizes = [16, 128], strides = [1, 1]} : vector<16x256xf32> to vector<16x128xf32>
    %9 = vector.extract_strided_slice %7 {offsets = [0, 128], sizes = [16, 128], strides = [1, 1]} : vector<16x256xf32> to vector<16x128xf32>
    %c0_6 = arith.constant 0 : index
    %c0_7 = arith.constant 0 : index
    %10 = vector.load %arg4[%c0_6, %c0_7] : memref<1x128xf32, #tpu.memory_space<vmem>>, vector<1x128xf32>
    %11 = vector.broadcast %10 : vector<1x128xf32> to vector<16x128xf32>
    %12 = arith.mulf %8, %11 : vector<16x128xf32>
    %cst_8 = arith.constant dense<0.000000e+00> : vector<16xf32>
    %13 = vector.multi_reduction <add>, %12, %cst_8 [1] : vector<16x128xf32> to vector<16xf32>
    %14 = vector.shape_cast %13 : vector<16xf32> to vector<16x1xf32>
    %c0_9 = arith.constant 0 : index
    %c0_10 = arith.constant 0 : index
    %15 = vector.load %arg5[%c0_9, %c0_10] : memref<1x1xf32, #tpu.memory_space<vmem>>, vector<1x1xf32>
    %16 = vector.broadcast %15 : vector<1x1xf32> to vector<16x1xf32>
    %17 = arith.addf %14, %16 : vector<16x1xf32>
    %c0_11 = arith.constant 0 : index
    %c0_12 = arith.constant 0 : index
    %18 = vector.load %arg6[%c0_11, %c0_12] : memref<128x4xf32, #tpu.memory_space<vmem>>, vector<128x4xf32>
    %cst_13 = arith.constant dense<0.000000e+00> : vector<16x4xf32>
    %19 = tpu.matmul %9, %18, %cst_13 {dimension_numbers = #tpu.dot_dimension_numbers<[1], [0], [0], [1], [0, 0, 1, 1], [], []>} : vector<16x128xf32>, vector<128x4xf32>, vector<16x4xf32> -> vector<16x4xf32>
    %c0_14 = arith.constant 0 : index
    %c0_15 = arith.constant 0 : index
    %20 = vector.load %arg7[%c0_14, %c0_15] : memref<1x4xf32, #tpu.memory_space<vmem>>, vector<1x4xf32>
    %21 = vector.broadcast %20 : vector<1x4xf32> to vector<16x4xf32>
    %22 = arith.addf %19, %21 : vector<16x4xf32>
    %c0_16 = arith.constant 0 : index
    %c0_17 = arith.constant 0 : index
    %23 = vector.load %arg8[%c0_16, %c0_17] : memref<16x1xf32, #tpu.memory_space<vmem>>, vector<16x1xf32>
    tpu.vector_store %arg8[%c0_16, %c0_17], %17 {strides = array<i32>} : memref<16x1xf32, #tpu.memory_space<vmem>>, vector<16x1xf32>,
    %c0_18 = arith.constant 0 : index
    %c0_19 = arith.constant 0 : index
    %24 = vector.load %arg9[%c0_18, %c0_19] : memref<16x4xf32, #tpu.memory_space<vmem>>, vector<16x4xf32>
    tpu.vector_store %arg9[%c0_18, %c0_19], %22 {strides = array<i32>} : memref<16x4xf32, #tpu.memory_space<vmem>>, vector<16x4xf32>,
    return
  }
  func.func @transform_0(%arg0: i32) -> (i32, i32) {
    %c0_i32 = arith.constant 0 : i32
    %c0_i32_0 = arith.constant 0 : i32
    return %arg0, %c0_i32 : i32, i32
  }
  func.func @transform_1(%arg0: i32) -> (i32, i32) {
    %c0_i32 = arith.constant 0 : i32
    %c0_i32_0 = arith.constant 0 : i32
    %c0_i32_1 = arith.constant 0 : i32
    return %c0_i32, %c0_i32_0 : i32, i32
  }
  func.func @transform_2(%arg0: i32) -> (i32, i32) {
    %c0_i32 = arith.constant 0 : i32
    %c0_i32_0 = arith.constant 0 : i32
    %c0_i32_1 = arith.constant 0 : i32
    return %c0_i32, %c0_i32_0 : i32, i32
  }
  func.func @transform_3(%arg0: i32) -> (i32, i32) {
    %c0_i32 = arith.constant 0 : i32
    %c0_i32_0 = arith.constant 0 : i32
    %c0_i32_1 = arith.constant 0 : i32
    return %c0_i32, %c0_i32_0 : i32, i32
  }
  func.func @transform_4(%arg0: i32) -> (i32, i32) {
    %c0_i32 = arith.constant 0 : i32
    %c0_i32_0 = arith.constant 0 : i32
    %c0_i32_1 = arith.constant 0 : i32
    return %c0_i32, %c0_i32_0 : i32, i32
  }
  func.func @transform_5(%arg0: i32) -> (i32, i32) {
    %c0_i32 = arith.constant 0 : i32
    %c0_i32_0 = arith.constant 0 : i32
    %c0_i32_1 = arith.constant 0 : i32
    return %c0_i32, %c0_i32_0 : i32, i32
  }
  func.func @transform_6(%arg0: i32) -> (i32, i32) {
    %c0_i32 = arith.constant 0 : i32
    %c0_i32_0 = arith.constant 0 : i32
    %c0_i32_1 = arith.constant 0 : i32
    return %c0_i32, %c0_i32_0 : i32, i32
  }
  func.func @transform_7(%arg0: i32) -> (i32, i32) {
    %c0_i32 = arith.constant 0 : i32
    %c0_i32_0 = arith.constant 0 : i32
    return %arg0, %c0_i32 : i32, i32
  }
  func.func @transform_8(%arg0: i32) -> (i32, i32) {
    %c0_i32 = arith.constant 0 : i32
    %c0_i32_0 = arith.constant 0 : i32
    return %arg0, %c0_i32 : i32, i32
  }
}

</mosaic_0001>

<bundles_post_ra>
// kernel: prediction_head_forward.1
= control target key start
LH: loop header
LB: loop body
LE: loop exit
PB: predicated region body
PF: predicated region fallthrough
CT: control target
= control target key end

     0   :  { %v333_v3 = vmov 0.0   ;;  %vm52_vm0 = vcmask 261120   ;;  %v42_v28 = vlaneseq  ;;  %vm260_vm1 = vcmask 7168   ;;  %s483_s1 = inlined_call_operand.vmem [shape: f32[32,256], index: 1, kind: input, shape index: {}]   ;;  %s484_s5 = inlined_call_operand.vmem [shape: f32[128,4], index: 5, kind: input, shape index: {}]   ;;  %s485_s0 = inlined_call_operand.vmem [shape: f32[16,32], index: 0, kind: input, shape index: {}]   ;;  %s486_s4 = inlined_call_operand.<no memory space> [shape: f32[1,1], index: 4, kind: input, shape index: {}]   ;;  %s487_s2 = inlined_call_operand.vmem [shape: f32[1,256], index: 2, kind: input, shape index: {}]   ;;  %s488_s3 = inlined_call_operand.vmem [shape: f32[1,128], index: 3, kind: input, shape index: {}]   ;;  %s489_s7 = inlined_call_operand.vmem [shape: f32[16,1], index: 7, kind: output, shape index: {0}]   ;;  %s490_s6 = inlined_call_operand.vmem [shape: f32[1,4], index: 6, kind: input, shape index: {}]   ;;  %s491_s8 = inlined_call_operand.vmem [shape: f32[16,4], index: 8, kind: output, shape index: {1}]  }
   0x1   :  { %v39_v0 = vld [vmem:[%s483_s1 + $0x38] sm:$0xff]  ;;  %v38_v1 = vld [vmem:[%s483_s1 + $0x30] sm:$0xff]  ;;  %v37_v2 = vld [vmem:[%s483_s1 + $0x28] sm:$0xff]  ;;  %123 = vmatprep.mubr.f32.mxu0 %v333_v3  ;;  %v14_v27 = vstv %s486_s4  ;;  %vm263_vm2 = vcmask 31744  }
   0x2   :  { %83 = vmatprep.subr.mxu0 %v39_v0  ;;  %v36_v4 = vld [vmem:[%s483_s1 + $0x20] sm:$0xff]  ;;  %v35_v5 = vld [vmem:[%s483_s1 + $0x18] sm:$0xff]  ;;  %v34_v6 = vld [vmem:[%s483_s1 + $0x10] sm:$0xff]  ;;  %15 = vst [vmem:[#allocation2] sm:$0x1] %v14_v27  ;;  %v43_v29 = vshrl.u32 %v42_v28, 7 }
   0x3   :  { %84 = vmatpush1.msra.mxu0 %v38_v1  ;;  %v177_v7 = vld [vmem:[%s484_s5 + $0x78] sm:$0xff]  ;;  %v176_v8 = vld [vmem:[%s484_s5 + $0x70] sm:$0xff]  ;;  %v33_v9 = vld [vmem:[%s483_s1 + $0x8] sm:$0xff] }
   0x4   :  { %85 = vmatprep.subr.mxu0 %v37_v2  ;;  %297 = vmatprep.subr.mxu1 %v177_v7  ;;  %v32_v10 = vld [vmem:[%s483_s1] sm:$0xff]  ;;  %v175_v11 = vld [vmem:[%s484_s5 + $0x68] sm:$0xff]  ;;  %v173_v14 = vld [vmem:[%s484_s5 + $0x58] sm:$0xff]  ;;  %v44_v30 = vsub.s32 0, %v43_v29  ;;  %v48_v32 = vsub.s32 1, %v43_v29 }
   0x5   :  { %86 = vmatpush1.msra.mxu0 %v36_v4  ;;  %298 = vmatpush3.msra.mxu1 %v177_v7  ;;  %v30_v12 = vld [vmem:[%s485_s0] sm:$0xff]  ;;  %v31_v15 = vld [vmem:[%s485_s0 + $0x8] sm:$0xff]  ;;  %v172_v16 = vld [vmem:[%s484_s5 + $0x50] sm:$0xff] }
   0x6   :  { %87 = vmatprep.subr.mxu0 %v35_v5  ;;  %299 = vmatprep.subr.mxu1 %v176_v8  ;;  %v174_v13 = vld [vmem:[%s484_s5 + $0x60] sm:$0xff]  ;;  %v171_v17 = vld [vmem:[%s484_s5 + $0x48] sm:$0xff]  ;;  %v169_v19 = vld [vmem:[%s484_s5 + $0x38] sm:$0xff] }
   0x7   :  { %88 = vmatpush1.msra.mxu0 %v34_v6  ;;  %300 = vmatpush3.msra.mxu1 %v176_v8  ;;  %v170_v18 = vld [vmem:[%s484_s5 + $0x40] sm:$0xff]  ;;  %v168_v20 = vld [vmem:[%s484_s5 + $0x30] sm:$0xff]  ;;  %v167_v21 = vld [vmem:[%s484_s5 + $0x28] sm:$0xff] }
   0x8   :  { %89 = vmatprep.subr.mxu0 %v33_v9  ;;  %301 = vmatprep.subr.mxu1 %v175_v11  ;;  %v166_v22 = vld [vmem:[%s484_s5 + $0x20] sm:$0xff]  ;;  %v165_v23 = vld [vmem:[%s484_s5 + $0x18] sm:$0xff]  ;;  %v164_v24 = vld [vmem:[%s484_s5 + $0x10] sm:$0xff] }
   0x9   :  { %90 = vmatpush1.msra.mxu0 %v32_v10  ;;  %302 = vmatpush3.msra.mxu1 %v175_v11  ;;  %v163_v25 = vld [vmem:[%s484_s5 + $0x8] sm:$0xff]  ;;  %v162_v26 = vld [vmem:[%s484_s5] sm:$0xff] }
   0xa   :  { %274 = vmatmul.mubr.msk.f32.vlgmr.msra.gmra.mxu0 %vm52_vm0, %v30_v12  ;;  %303 = vmatprep.subr.mxu1 %v174_v13  ;;  %v40_v31 = vld [vmem:[%s487_s2] sm:$0x3] }
   0xb   :  { %129 = vmatprep.mubr.f32.mxu0 %v333_v3  ;;  %304 = vmatpush3.msra.mxu1 %v174_v13  ;;  %v45_v33 = vrot.slane %v40_v31, %v44_v30  ;;  %v49_v34 = vrot.slane %v40_v31, %v48_v32  ;;  %v276_v38 = vld [vmem:[%s488_s3] ss:$0 sm:$0xff] }
   0xc   :  { %305 = vmatprep.subr.mxu1 %v173_v14  ;;  %v277_v50 = vld [vmem:[#allocation2] ss:$0 sm:$0xff] }
   0xd   :  { %306 = vmatpush3.msra.mxu1 %v173_v14  ;;  %v278_v55 = vld [vmem:[%s490_s6] ss:$0 sm:$0xff] }
   0xe   :  { %275 = vmatmul.mubr.msk.f32.gmra.mxu0 %vm52_vm0, %v31_v15  ;;  %307 = vmatprep.subr.mxu1 %v172_v16 }
   0xf   :  { %308 = vmatpush3.msra.mxu1 %v172_v16 }
  0x10   :  { %309 = vmatprep.subr.mxu1 %v171_v17 }
  0x11   :  { %310 = vmatpush3.msra.mxu1 %v171_v17 }
  0x12   :  { %311 = vmatprep.subr.mxu1 %v170_v18 }
  0x13   :  { %312 = vmatpush3.msra.mxu1 %v170_v18 }
  0x14   :  { %313 = vmatprep.subr.mxu1 %v169_v19 }
  0x15   :  { %314 = vmatpush3.msra.mxu1 %v169_v19 }
  0x16   :  { %315 = vmatprep.subr.mxu1 %v168_v20 }
  0x17   :  { %316 = vmatpush3.msra.mxu1 %v168_v20 }
  0x18   :  { %317 = vmatprep.subr.mxu1 %v167_v21 }
  0x19   :  { %318 = vmatpush3.msra.mxu1 %v167_v21 }
  0x1a   :  { %319 = vmatprep.subr.mxu1 %v166_v22 }
  0x1b   :  { %320 = vmatpush3.msra.mxu1 %v166_v22 }
  0x1c   :  { %321 = vmatprep.subr.mxu1 %v165_v23 }
  0x1d   :  { %322 = vmatpush3.msra.mxu1 %v165_v23 }
  0x1e   :  { %323 = vmatprep.subr.mxu1 %v164_v24 }
  0x1f   :  { %324 = vmatpush3.msra.mxu1 %v164_v24 }
  0x20   :  { %325 = vmatprep.subr.mxu1 %v163_v25 }
  0x21   :  { %326 = vmatpush3.msra.mxu1 %v163_v25 }
  0x22   :  { %327 = vmatprep.subr.mxu1 %v162_v26 }
  0x23   :  { %328 = vmatpush3.msra.mxu1 %v162_v26 }
  0xca   :  { %v125_v35 = vpop.f32.mrf.mxu0 }
  0xcb   :  { %v126_v36 = vadd.f32 %v125_v35, %v45_v33 }
  0xcc   :  { %v127_v37 = vpop.f32.mrf.mxu0 }
  0xcd   :  { %v136_v39 = vmax.f32 %v126_v36, 0.0  ;;  %v128_v40 = vadd.f32 %v127_v37, %v49_v34 }
  0xce   :  { %v131_v41 = vpop.f32.mrf.mxu0 }
  0xcf   :  { %v132_v42 = vadd.f32 %v131_v41, %v45_v33  ;;  %v137_v43 = vmax.f32 %v128_v40, 0.0  ;;  %v147_v44 = vmul.f32 %v276_v38, %v136_v39 }
  0xd0   :  { %v133_v45 = vpop.f32.mrf.mxu0 }
  0xd1   :  { %v138_v46 = vmax.f32 %v132_v42, 0.0  ;;  %v134_v47 = vadd.f32 %v133_v45, %v49_v34  ;;  %329 = vmatprep.mubr.f32.mxu1 %v137_v43  ;;  %149 = vadd.xlane.f32.xlu0 %v147_v44 }
  0xd3   :  { %v139_v48 = vmax.f32 %v134_v47, 0.0  ;;  %v148_v49 = vmul.f32 %v276_v38, %v138_v46 }
  0xd5   :  { %330 = vmatmul.mubr.f32.vlgmr.msra.gmra.mxu1 %v139_v48  ;;  %151 = vadd.xlane.f32.xlu0 %v148_v49 }
 0x15a   :  { %v150_v51 = vpop.xlane.xlu0 %149 }
 0x15b   :  { %v160_v52 = vadd.f32 %v277_v50, %v150_v51 }
 0x15d   :  { %261 = vst.msk [vmem:[%s489_s7] sm:$0xff] %vm260_vm1, %v160_v52 }
 0x15e   :  { %v152_v53 = vpop.xlane.xlu0 %151 }
 0x15f   :  { %v161_v54 = vadd.f32 %v277_v50, %v152_v53 }
 0x161   :  { %262 = vst.msk [vmem:[%s489_s7 + $0x8] sm:$0xff] %vm260_vm1, %v161_v54 }
 0x195   :  { %v331_v56 = vpop.f32.mrf.mxu1 }
 0x196   :  { %v257_v57 = vadd.f32 %v331_v56, %v278_v55 }
 0x197   :  { %v251_v58 = vpop.f32.mrf.mxu1 }
 0x198   :  { %265 = vst.msk [vmem:[%s491_s8 + $0x8] sm:$0xff] %vm263_vm2, %v257_v57  ;;  %v252_v59 = vadd.f32 %v278_v55, %v251_v58 }
 0x19a   :  { %264 = vst.msk [vmem:[%s491_s8] sm:$0xff] %vm263_vm2, %v252_v59 }

</bundles_post_ra>
